<compile_context>
chip_gen: v7x
topology: tpu7x:2x2x1
jax: 0.10.0
libtpu: 0.0.40
codegen_flags: <defaults>
</compile_context>

<pallas_src>
import functools

import jax
import jax.numpy as jnp
from jax.experimental import pallas as pl
from jax.experimental.pallas import tpu as pltpu


def _round_up(x, m):
    return (x + m - 1) // m * m


# ---------------------------------------------------------------------------
# Pallas kernel: fused (x @ w) + bias (+ ReLU), bf16 in / f32 accumulate+out
# ---------------------------------------------------------------------------
def _matmul_bias_act_kernel(x_ref, w_ref, b_ref, o_ref, *, apply_relu):
    acc = jnp.dot(x_ref[...], w_ref[...], preferred_element_type=jnp.float32)
    acc = acc + b_ref[...]                       # (1, N) f32 broadcasts over rows
    if apply_relu:
        acc = jnp.maximum(acc, 0.0)
    o_ref[...] = acc.astype(o_ref.dtype)


# Row-tile cap: 256 feeds the 256-wide MXU on v6e/v7x; at the small M used here
# the effective tile is <=128, which is also the right size for v5e.
_TM_MAX = 256


def fused_matmul_bias_act(x, w, b, *, apply_relu=True):
    """y = [relu](x @ w + b); x:(M,K) w:(K,N) b:(N,) -> (M,N) float32.

    K and N are used at full extent (no padding); only M is padded (rarely)
    up to the adaptive row tile.
    """
    M, K = x.shape
    K2, N = w.shape
    assert K == K2

    tm = min(_round_up(M, 8), _TM_MAX)
    Mp = _round_up(M, tm)
    if Mp != M:
        x = jnp.pad(x, ((0, Mp - M), (0, 0)))

    xb = x.astype(jnp.bfloat16)                  # MXU is bf16-native
    wb = w.astype(jnp.bfloat16)
    b2 = b.reshape(1, N).astype(jnp.float32)     # keep bias/accumulator in f32

    cost = pl.CostEstimate(
        flops=2 * Mp * K * N,
        transcendentals=0,
        bytes_accessed=Mp * K * 2 + K * N * 2 + N * 4 + Mp * N * 4,
    )

    out = pl.pallas_call(
        functools.partial(_matmul_bias_act_kernel, apply_relu=apply_relu),
        out_shape=jax.ShapeDtypeStruct((Mp, N), jnp.float32),
        grid=(Mp // tm,),
        in_specs=[
            # last dims equal the full array dims -> (8,128) rule satisfied
            pl.BlockSpec((tm, K), lambda i: (i, 0)),
            pl.BlockSpec((K, N), lambda i: (0, 0)),   # grid-invariant weight
            pl.BlockSpec((1, N), lambda i: (0, 0)),   # grid-invariant bias
        ],
        out_specs=pl.BlockSpec((tm, N), lambda i: (i, 0)),
        compiler_params=pltpu.CompilerParams(
            dimension_semantics=("parallel",)),
        cost_estimate=cost,
    )(xb, wb, b2)

    if Mp != M:
        out = out[:M]
    return out


# ---------------------------------------------------------------------------
# Conv2d(k=3, s=2, p=1) + ReLU in an internal channels-last layout.
# Internal activation layout: (B, R, S, C) with R = torch W (time) and
# S = torch H (feature).  The conv is spatially symmetric, so we only permute
# the weight (once) instead of transposing activations.
# ---------------------------------------------------------------------------
def conv2d_relu_cl(x, w, b, *, k=3, s=2, p=1):
    # x: (B, R, S, C) internal;  w: (Cout, Cin, kH, kW) PyTorch OIHW;  b: (Cout,)
    B, R, S, C = x.shape
    Cout = w.shape[0]
    Ro = (R + 2 * p - k) // s + 1
    So = (S + 2 * p - k) // s + 1

    xp = jnp.pad(x, ((0, 0), (p, p), (p, p), (0, 0)))
    patches = []
    for dr in range(k):          # slides along internal rows  -> torch kW
        for dc in range(k):      # slides along internal cols  -> torch kH
            patches.append(
                xp[:, dr:dr + s * (Ro - 1) + 1:s,
                      dc:dc + s * (So - 1) + 1:s, :])        # (B, Ro, So, C)
    cols = jnp.stack(patches, axis=3)                        # (B, Ro, So, k*k, C)
    cols = cols.reshape(B * Ro * So, k * k * C)              # pure view: no transpose

    # w_mat[(dr*k + dc)*C + c, o] = w[o, c, kH=dc, kW=dr]
    w_mat = jnp.transpose(w, (3, 2, 1, 0)).reshape(k * k * C, Cout)

    y = fused_matmul_bias_act(cols, w_mat, b, apply_relu=True)
    return y.reshape(B, Ro, So, Cout)                        # stays channels-last


def get_output_dim(n_feats, k=3, s=2, p=1):
    d = (n_feats + 2 * p - k) // s + 1
    d = (d + 2 * p - k) // s + 1
    return d


# ---------------------------------------------------------------------------
# InputEncoder forward (conv_subsampling='cnn' path)
# ---------------------------------------------------------------------------
def _input_encoder_forward(x, x_lens, params):
    # x: (B, 1, n_feats, seq_len) -- PyTorch NCHW layout of the module.
    B = x.shape[0]

    # one cheap layout change of the raw single-channel input: (B, T, F, 1)
    h = jnp.transpose(x, (0, 3, 2, 1))

    h = conv2d_relu_cl(h, params["w1"], params["b1"])        # (B, T1, F1, C)
    h = conv2d_relu_cl(h, params["w2"], params["b2"])        # (B, T2, F2, C)
    _, T2, F2, C = h.shape

    # Linear over per-timestep features. PyTorch feature order is c*F2 + f,
    # ours (pure view of channels-last) is f*C + c -> permute the weight once.
    E = params["w_lin"].shape[0]
    w_lin = params["w_lin"].reshape(E, C, F2).transpose(2, 1, 0).reshape(F2 * C, E)

    a = h.reshape(B * T2, F2 * C)                            # pure view
    y = fused_matmul_bias_act(a, w_lin, params["b_lin"], apply_relu=False)
    y = y.reshape(B, T2, E)

    # Dropout: identity in eval mode (see TODO above).
    out_lens = (x_lens >> 2) - 1                             # CNN_Layers branch
    return y, out_lens


input_encoder_forward = jax.jit(_input_encoder_forward)


# ---------------------------------------------------------------------------
# Pure-JAX reference (mirrors the PyTorch module exactly, in f32)
# ---------------------------------------------------------------------------
def _forward_ref(x, x_lens, params):
    def conv_relu(h, w, b):
        y = jax.lax.conv_general_dilated(
            h, w, window_strides=(2, 2), padding=((1, 1), (1, 1)),
            dimension_numbers=("NCHW", "OIHW", "NCHW"))
        return jnp.maximum(y + b[None, :, None, None], 0.0)

    y = conv_relu(x, params["w1"], params["b1"])
    y = conv_relu(y, params["w2"], params["b2"])
    B, C, D, T = y.shape
    feat = y.reshape(B, C * D, T).transpose(0, 2, 1)         # (B, T, C*D)
    out = feat @ params["w_lin"].T + params["b_lin"]
    out_lens = (x_lens >> 2) - 1
    return out, out_lens


if __name__ == "__main__":
    # Small shapes consistent with the module (scaled-down channels/feats).
    B = 2
    n_feats = 16          # torch H
    seq_len = 16          # torch W
    out_channels = 32
    embed_dim = 32

    key = jax.random.PRNGKey(0)
    ks = jax.random.split(key, 7)

    x = jax.random.normal(ks[0], (B, 1, n_feats, seq_len), dtype=jnp.float32)
    x_lens = jnp.array([seq_len, seq_len - 4], dtype=jnp.int32)

    feat_out = get_output_dim(n_feats)                       # 4
    params = {
        "w1": 0.1 * jax.random.normal(ks[1], (out_channels, 1, 3, 3), jnp.float32),
        "b1": 0.1 * jax.random.normal(ks[2], (out_channels,), jnp.float32),
        "w2": 0.1 * jax.random.normal(ks[3], (out_channels, out_channels, 3, 3), jnp.float32),
        "b2": 0.1 * jax.random.normal(ks[4], (out_channels,), jnp.float32),
        "w_lin": 0.1 * jax.random.normal(ks[5], (embed_dim, out_channels * feat_out), jnp.float32),
        "b_lin": 0.1 * jax.random.normal(ks[6], (embed_dim,), jnp.float32),
    }

    out, out_lens = jax.block_until_ready(input_encoder_forward(x, x_lens, params))
    ref, ref_lens = _forward_ref(x, x_lens, params)

    time_out = get_output_dim(seq_len)                       # 4
    assert out.shape == (B, time_out, embed_dim), out.shape
    assert jnp.array_equal(out_lens, ref_lens), (out_lens, ref_lens)
    assert jnp.array_equal(out_lens, jnp.array([3, 2], jnp.int32)), out_lens
    # bf16 MXU inputs -> loosened tolerance vs f32 reference
    assert jnp.allclose(out, ref, atol=3e-2, rtol=3e-2), float(jnp.max(jnp.abs(out - ref)))

    print("KERNEL_OK")
</pallas_src>

<mosaic_0001>
module attributes {stable_mosaic.version = 11 : i64} {
  func.func @_matmul_bias_act_kernel(%arg0: i32, %arg1: memref<128x9xbf16, #tpu.memory_space<vmem>>, %arg2: memref<9x32xbf16, #tpu.memory_space<vmem>>, %arg3: memref<1x32xf32, #tpu.memory_space<vmem>>, %arg4: memref<128x32xf32, #tpu.memory_space<vmem>>) attributes {dimension_semantics = [#tpu.dimension_semantics<parallel>], iteration_bounds = array<i64: 1>, scalar_prefetch = 0 : i64, scratch_operands = 0 : i64, tpu.core_type = #tpu.core_type<tc>, window_params = [{transform_indices = @transform_0, window_bounds = array<i64: 128, 9>}, {pipeline_mode = #tpu.pipeline_mode<synchronous>, transform_indices = @transform_1, window_bounds = array<i64: 9, 32>}, {pipeline_mode = #tpu.pipeline_mode<synchronous>, transform_indices = @transform_2, window_bounds = array<i64: 1, 32>}, {transform_indices = @transform_3, window_bounds = array<i64: 128, 32>}]} {
    %c0 = arith.constant 0 : index
    %c0_0 = arith.constant 0 : index
    %0 = vector.load %arg1[%c0, %c0_0] : memref<128x9xbf16, #tpu.memory_space<vmem>>, vector<128x9xbf16>
    %c0_1 = arith.constant 0 : index
    %c0_2 = arith.constant 0 : index
    %1 = vector.load %arg2[%c0_1, %c0_2] : memref<9x32xbf16, #tpu.memory_space<vmem>>, vector<9x32xbf16>
    %cst = arith.constant dense<0.000000e+00> : vector<128x32xf32>
    %2 = tpu.matmul %0, %1, %cst {dimension_numbers = #tpu.dot_dimension_numbers<[1], [0], [0], [1], [0, 0, 1, 1], [], []>} : vector<128x9xbf16>, vector<9x32xbf16>, vector<128x32xf32> -> vector<128x32xf32>
    %c0_3 = arith.constant 0 : index
    %c0_4 = arith.constant 0 : index
    %3 = vector.load %arg3[%c0_3, %c0_4] : memref<1x32xf32, #tpu.memory_space<vmem>>, vector<1x32xf32>
    %4 = vector.broadcast %3 : vector<1x32xf32> to vector<128x32xf32>
    %5 = arith.addf %2, %4 : vector<128x32xf32>
    %cst_5 = arith.constant 0.000000e+00 : f32
    %6 = vector.broadcast %cst_5 : f32 to vector<128x32xf32>
    %7 = arith.maximumf %5, %6 : vector<128x32xf32>
    %c0_6 = arith.constant 0 : index
    %c0_7 = arith.constant 0 : index
    %8 = vector.load %arg4[%c0_6, %c0_7] : memref<128x32xf32, #tpu.memory_space<vmem>>, vector<128x32xf32>
    tpu.vector_store %arg4[%c0_6, %c0_7], %7 {strides = array<i32>} : memref<128x32xf32, #tpu.memory_space<vmem>>, vector<128x32xf32>,
    return
  }
  func.func @transform_0(%arg0: i32) -> (i32, i32) {
    %c0_i32 = arith.constant 0 : i32
    %c0_i32_0 = arith.constant 0 : i32
    return %arg0, %c0_i32 : i32, i32
  }
  func.func @transform_1(%arg0: i32) -> (i32, i32) {
    %c0_i32 = arith.constant 0 : i32
    %c0_i32_0 = arith.constant 0 : i32
    %c0_i32_1 = arith.constant 0 : i32
    return %c0_i32, %c0_i32_0 : i32, i32
  }
  func.func @transform_2(%arg0: i32) -> (i32, i32) {
    %c0_i32 = arith.constant 0 : i32
    %c0_i32_0 = arith.constant 0 : i32
    %c0_i32_1 = arith.constant 0 : i32
    return %c0_i32, %c0_i32_0 : i32, i32
  }
  func.func @transform_3(%arg0: i32) -> (i32, i32) {
    %c0_i32 = arith.constant 0 : i32
    %c0_i32_0 = arith.constant 0 : i32
    return %arg0, %c0_i32 : i32, i32
  }
}

module attributes {stable_mosaic.version = 11 : i64} {
  func.func @_matmul_bias_act_kernel(%arg0: i32, %arg1: memref<32x288xbf16, #tpu.memory_space<vmem>>, %arg2: memref<288x32xbf16, #tpu.memory_space<vmem>>, %arg3: memref<1x32xf32, #tpu.memory_space<vmem>>, %arg4: memref<32x32xf32, #tpu.memory_space<vmem>>) attributes {dimension_semantics = [#tpu.dimension_semantics<parallel>], iteration_bounds = array<i64: 1>, scalar_prefetch = 0 : i64, scratch_operands = 0 : i64, tpu.core_type = #tpu.core_type<tc>, window_params = [{transform_indices = @transform_0, window_bounds = array<i64: 32, 288>}, {pipeline_mode = #tpu.pipeline_mode<synchronous>, transform_indices = @transform_1, window_bounds = array<i64: 288, 32>}, {pipeline_mode = #tpu.pipeline_mode<synchronous>, transform_indices = @transform_2, window_bounds = array<i64: 1, 32>}, {transform_indices = @transform_3, window_bounds = array<i64: 32, 32>}]} {
    %c0 = arith.constant 0 : index
    %c0_0 = arith.constant 0 : index
    %0 = vector.load %arg1[%c0, %c0_0] : memref<32x288xbf16, #tpu.memory_space<vmem>>, vector<32x288xbf16>
    %c0_1 = arith.constant 0 : index
    %c0_2 = arith.constant 0 : index
    %1 = vector.load %arg2[%c0_1, %c0_2] : memref<288x32xbf16, #tpu.memory_space<vmem>>, vector<288x32xbf16>
    %cst = arith.constant dense<0.000000e+00> : vector<32x32xf32>
    %2 = tpu.matmul %0, %1, %cst {dimension_numbers = #tpu.dot_dimension_numbers<[1], [0], [0], [1], [0, 0, 1, 1], [], []>} : vector<32x288xbf16>, vector<288x32xbf16>, vector<32x32xf32> -> vector<32x32xf32>
    %c0_3 = arith.constant 0 : index
    %c0_4 = arith.constant 0 : index
    %3 = vector.load %arg3[%c0_3, %c0_4] : memref<1x32xf32, #tpu.memory_space<vmem>>, vector<1x32xf32>
    %4 = vector.broadcast %3 : vector<1x32xf32> to vector<32x32xf32>
    %5 = arith.addf %2, %4 : vector<32x32xf32>
    %cst_5 = arith.constant 0.000000e+00 : f32
    %6 = vector.broadcast %cst_5 : f32 to vector<32x32xf32>
    %7 = arith.maximumf %5, %6 : vector<32x32xf32>
    %c0_6 = arith.constant 0 : index
    %c0_7 = arith.constant 0 : index
    %8 = vector.load %arg4[%c0_6, %c0_7] : memref<32x32xf32, #tpu.memory_space<vmem>>, vector<32x32xf32>
    tpu.vector_store %arg4[%c0_6, %c0_7], %7 {strides = array<i32>} : memref<32x32xf32, #tpu.memory_space<vmem>>, vector<32x32xf32>,
    return
  }
  func.func @transform_0(%arg0: i32) -> (i32, i32) {
    %c0_i32 = arith.constant 0 : i32
    %c0_i32_0 = arith.constant 0 : i32
    return %arg0, %c0_i32 : i32, i32
  }
  func.func @transform_1(%arg0: i32) -> (i32, i32) {
    %c0_i32 = arith.constant 0 : i32
    %c0_i32_0 = arith.constant 0 : i32
    %c0_i32_1 = arith.constant 0 : i32
    return %c0_i32, %c0_i32_0 : i32, i32
  }
  func.func @transform_2(%arg0: i32) -> (i32, i32) {
    %c0_i32 = arith.constant 0 : i32
    %c0_i32_0 = arith.constant 0 : i32
    %c0_i32_1 = arith.constant 0 : i32
    return %c0_i32, %c0_i32_0 : i32, i32
  }
  func.func @transform_3(%arg0: i32) -> (i32, i32) {
    %c0_i32 = arith.constant 0 : i32
    %c0_i32_0 = arith.constant 0 : i32
    return %arg0, %c0_i32 : i32, i32
  }
}

module attributes {stable_mosaic.version = 11 : i64} {
  func.func @_matmul_bias_act_kernel(%arg0: i32, %arg1: memref<8x128xbf16, #tpu.memory_space<vmem>>, %arg2: memref<128x32xbf16, #tpu.memory_space<vmem>>, %arg3: memref<1x32xf32, #tpu.memory_space<vmem>>, %arg4: memref<8x32xf32, #tpu.memory_space<vmem>>) attributes {dimension_semantics = [#tpu.dimension_semantics<parallel>], iteration_bounds = array<i64: 1>, scalar_prefetch = 0 : i64, scratch_operands = 0 : i64, tpu.core_type = #tpu.core_type<tc>, window_params = [{transform_indices = @transform_0, window_bounds = array<i64: 8, 128>}, {pipeline_mode = #tpu.pipeline_mode<synchronous>, transform_indices = @transform_1, window_bounds = array<i64: 128, 32>}, {pipeline_mode = #tpu.pipeline_mode<synchronous>, transform_indices = @transform_2, window_bounds = array<i64: 1, 32>}, {transform_indices = @transform_3, window_bounds = array<i64: 8, 32>}]} {
    %c0 = arith.constant 0 : index
    %c0_0 = arith.constant 0 : index
    %0 = vector.load %arg1[%c0, %c0_0] : memref<8x128xbf16, #tpu.memory_space<vmem>>, vector<8x128xbf16>
    %c0_1 = arith.constant 0 : index
    %c0_2 = arith.constant 0 : index
    %1 = vector.load %arg2[%c0_1, %c0_2] : memref<128x32xbf16, #tpu.memory_space<vmem>>, vector<128x32xbf16>
    %cst = arith.constant dense<0.000000e+00> : vector<8x32xf32>
    %2 = tpu.matmul %0, %1, %cst {dimension_numbers = #tpu.dot_dimension_numbers<[1], [0], [0], [1], [0, 0, 1, 1], [], []>} : vector<8x128xbf16>, vector<128x32xbf16>, vector<8x32xf32> -> vector<8x32xf32>
    %c0_3 = arith.constant 0 : index
    %c0_4 = arith.constant 0 : index
    %3 = vector.load %arg3[%c0_3, %c0_4] : memref<1x32xf32, #tpu.memory_space<vmem>>, vector<1x32xf32>
    %4 = vector.broadcast %3 : vector<1x32xf32> to vector<8x32xf32>
    %5 = arith.addf %2, %4 : vector<8x32xf32>
    %c0_5 = arith.constant 0 : index
    %c0_6 = arith.constant 0 : index
    %6 = vector.load %arg4[%c0_5, %c0_6] : memref<8x32xf32, #tpu.memory_space<vmem>>, vector<8x32xf32>
    tpu.vector_store %arg4[%c0_5, %c0_6], %5 {strides = array<i32>} : memref<8x32xf32, #tpu.memory_space<vmem>>, vector<8x32xf32>,
    return
  }
  func.func @transform_0(%arg0: i32) -> (i32, i32) {
    %c0_i32 = arith.constant 0 : i32
    %c0_i32_0 = arith.constant 0 : i32
    return %arg0, %c0_i32 : i32, i32
  }
  func.func @transform_1(%arg0: i32) -> (i32, i32) {
    %c0_i32 = arith.constant 0 : i32
    %c0_i32_0 = arith.constant 0 : i32
    %c0_i32_1 = arith.constant 0 : i32
    return %c0_i32, %c0_i32_0 : i32, i32
  }
  func.func @transform_2(%arg0: i32) -> (i32, i32) {
    %c0_i32 = arith.constant 0 : i32
    %c0_i32_0 = arith.constant 0 : i32
    %c0_i32_1 = arith.constant 0 : i32
    return %c0_i32, %c0_i32_0 : i32, i32
  }
  func.func @transform_3(%arg0: i32) -> (i32, i32) {
    %c0_i32 = arith.constant 0 : i32
    %c0_i32_0 = arith.constant 0 : i32
    return %arg0, %c0_i32 : i32, i32
  }
}

</mosaic_0001>

<bundles_post_ra>
// kernel: _input_encoder_forward.3
= control target key start
LH: loop header
LB: loop body
LE: loop exit
PB: predicated region body
PF: predicated region fallthrough
CT: control target
= control target key end

     0   :  { %vm110_vm0 = vcmask 1043456   ;;  %vm111_vm1 = vcmask 1044480   ;;  %vm85_vm2 = vcmask 72704   ;;  %v308_v1 = vmov 65535   ;;  %s431_s1 = inlined_call_operand.vmem [shape: bf16[9,32], index: 1, kind: input, shape index: {}]   ;;  %s432_s0 = inlined_call_operand.vmem [shape: bf16[128,9], index: 0, kind: input, shape index: {}]   ;;  %s433_s2 = inlined_call_operand.vmem [shape: f32[1,32], index: 2, kind: input, shape index: {}]   ;;  %s434_s3 = inlined_call_operand.vmem [shape: f32[128,32], index: 3, kind: output, shape index: {}]  }
   0x1   :  { %v299_v0 = vld [vmem:[%s431_s1] sm:$0x1f]   ;;  %v112_v2 = vsel %vm110_vm0, 4294967295, %v308_v1  ;;  %v302_v7 = vld [vmem:[%s432_s0 + $0x8] sm:$0xff]   ;;  %v304_v9 = vld [vmem:[%s432_s0 + $0x10] sm:$0xff]   ;;  %vm230_vm3 = vcmask 261120  }
   0x2   :  { %v300_v3 = vld [vmem:[%s432_s0] sm:$0xff]   ;;  %v113_v4 = vsel %vm111_vm1, %v112_v2, 0  ;;  %v303_v8 = vld [vmem:[%s432_s0 + $0x28] sm:$0xff]   ;;  %v305_v10 = vld [vmem:[%s432_s0 + $0x30] sm:$0xff]  }
   0x3   :  { %v301_v5 = vld [vmem:[%s432_s0 + $0x20] sm:$0xff]   ;;  %v115_v6 = vand.u32 %v299_v0, %v113_v4  ;;  %280 = vmatprep.mubr.msk.bf16.mxu0 %vm85_vm2, %v300_v3  ;;  %v306_v11 = vld [vmem:[%s432_s0 + $0x18] sm:$0xff]  }
   0x4   :  { %288 = vmatprep.mubr.msk.bf16.mxu1 %vm85_vm2, %v301_v5  ;;  %v307_v12 = vld [vmem:[%s432_s0 + $0x38] sm:$0xff]   ;;  %v251_v13 = vld [vmem:[%s433_s2] ss:$0 sm:$0xff] }
   0x5   :  { %278 = vmatprep.subr.bf16.mxu0 %v115_v6  ;;  %296 = vmatprep.subr.bf16.mxu1 %v115_v6 }
   0x6   :  { %279 = vmatpush3.bf16.msra.mxu0 %v115_v6  ;;  %297 = vmatpush3.bf16.msra.mxu1 %v115_v6 }
   0x9   :  { %281 = vmatmul.mubr.msk.bf16.vlgmr.msra.gmra.mrb[0].mxu0 %vm85_vm2, %v302_v7  ;;  %289 = vmatmul.mubr.msk.bf16.vlgmr.msra.gmra.mrb[0].mxu1 %vm85_vm2, %v303_v8 }
   0xa   :  { %284 = vmatprep.mubr.msk.bf16.mxu0 %vm85_vm2, %v304_v9  ;;  %292 = vmatprep.mubr.msk.bf16.mxu1 %vm85_vm2, %v305_v10 }
  0x11   :  { %285 = vmatmul.mubr.msk.bf16.gmra.mrb[4].mxu0 %vm85_vm2, %v306_v11  ;;  %293 = vmatmul.mubr.msk.bf16.gmra.mrb[4].mxu1 %vm85_vm2, %v307_v12 }
  0xdc   :  { %v282_v14 = vpop.f32.mrb[0].mxu0  ;;  %v290_v15 = vpop.f32.mrb[0].mxu1 }
  0xdd   :  { %v160_v16 = vadd.f32 %v282_v14, %v251_v13  ;;  %v192_v17 = vadd.f32 %v290_v15, %v251_v13  ;;  %v151_v18 = vpop.f32.mrb[1].mxu0  ;;  %v183_v19 = vpop.f32.mrb[1].mxu1 }
  0xde   :  { %v152_v20 = vadd.f32 %v251_v13, %v151_v18  ;;  %v184_v21 = vadd.f32 %v251_v13, %v183_v19  ;;  %v283_v22 = vpop.f32.mrb[2].mxu0  ;;  %v291_v23 = vpop.f32.mrb[2].mxu1 }
  0xdf   :  { %v216_v24 = vmax.f32 %v160_v16, 0.0  ;;  %v224_v25 = vmax.f32 %v192_v17, 0.0  ;;  %v163_v26 = vadd.f32 %v283_v22, %v251_v13  ;;  %v195_v27 = vadd.f32 %v291_v23, %v251_v13  ;;  %v154_v28 = vpop.f32.mrb[3].mxu0  ;;  %v186_v29 = vpop.f32.mrb[3].mxu1 }
  0xe0   :  { %v214_v30 = vmax.f32 %v152_v20, 0.0  ;;  %v222_v31 = vmax.f32 %v184_v21, 0.0  ;;  %v155_v32 = vadd.f32 %v251_v13, %v154_v28  ;;  %v187_v33 = vadd.f32 %v251_v13, %v186_v29 }
  0xe1   :  { %233 = vst.msk [vmem:[%s434_s3 + $0x10] sm:$0xff] %vm230_vm3, %v216_v24  ;;  %241 = vst.msk [vmem:[%s434_s3 + $0x50] sm:$0xff] %vm230_vm3, %v224_v25  ;;  %v217_v34 = vmax.f32 %v163_v26, 0.0  ;;  %v225_v35 = vmax.f32 %v195_v27, 0.0 }
  0xe2   :  { %231 = vst.msk [vmem:[%s434_s3] sm:$0xff] %vm230_vm3, %v214_v30  ;;  %239 = vst.msk [vmem:[%s434_s3 + $0x40] sm:$0xff] %vm230_vm3, %v222_v31  ;;  %v215_v36 = vmax.f32 %v155_v32, 0.0  ;;  %v223_v37 = vmax.f32 %v187_v33, 0.0 }
  0xe3   :  { %234 = vst.msk [vmem:[%s434_s3 + $0x18] sm:$0xff] %vm230_vm3, %v217_v34  ;;  %242 = vst.msk [vmem:[%s434_s3 + $0x58] sm:$0xff] %vm230_vm3, %v225_v35 }
  0xe4   :  { %232 = vst.msk [vmem:[%s434_s3 + $0x8] sm:$0xff] %vm230_vm3, %v215_v36  ;;  %240 = vst.msk [vmem:[%s434_s3 + $0x48] sm:$0xff] %vm230_vm3, %v223_v37  ;;  %v286_v38 = vpop.f32.mrb[4].mxu0  ;;  %v294_v39 = vpop.f32.mrb[4].mxu1 }
  0xe5   :  { %v176_v40 = vadd.f32 %v286_v38, %v251_v13  ;;  %v208_v41 = vadd.f32 %v294_v39, %v251_v13  ;;  %v167_v42 = vpop.f32.mrb[5].mxu0  ;;  %v199_v43 = vpop.f32.mrb[5].mxu1 }
  0xe6   :  { %v168_v44 = vadd.f32 %v251_v13, %v167_v42  ;;  %v200_v45 = vadd.f32 %v251_v13, %v199_v43  ;;  %v287_v46 = vpop.f32.mrb[6].mxu0  ;;  %v295_v47 = vpop.f32.mrb[6].mxu1 }
  0xe7   :  { %v220_v48 = vmax.f32 %v176_v40, 0.0  ;;  %v228_v49 = vmax.f32 %v208_v41, 0.0  ;;  %v179_v50 = vadd.f32 %v287_v46, %v251_v13  ;;  %v211_v51 = vadd.f32 %v295_v47, %v251_v13  ;;  %v170_v52 = vpop.f32.mrb[7].mxu0  ;;  %v202_v53 = vpop.f32.mrb[7].mxu1 }
  0xe8   :  { %v218_v54 = vmax.f32 %v168_v44, 0.0  ;;  %v226_v55 = vmax.f32 %v200_v45, 0.0  ;;  %v171_v56 = vadd.f32 %v251_v13, %v170_v52  ;;  %v203_v57 = vadd.f32 %v251_v13, %v202_v53 }
  0xe9   :  { %237 = vst.msk [vmem:[%s434_s3 + $0x30] sm:$0xff] %vm230_vm3, %v220_v48  ;;  %245 = vst.msk [vmem:[%s434_s3 + $0x70] sm:$0xff] %vm230_vm3, %v228_v49  ;;  %v221_v58 = vmax.f32 %v179_v50, 0.0  ;;  %v229_v59 = vmax.f32 %v211_v51, 0.0 }
  0xea   :  { %235 = vst.msk [vmem:[%s434_s3 + $0x20] sm:$0xff] %vm230_vm3, %v218_v54  ;;  %243 = vst.msk [vmem:[%s434_s3 + $0x60] sm:$0xff] %vm230_vm3, %v226_v55  ;;  %v219_v60 = vmax.f32 %v171_v56, 0.0  ;;  %v227_v61 = vmax.f32 %v203_v57, 0.0 }
  0xeb   :  { %238 = vst.msk [vmem:[%s434_s3 + $0x38] sm:$0xff] %vm230_vm3, %v221_v58  ;;  %246 = vst.msk [vmem:[%s434_s3 + $0x78] sm:$0xff] %vm230_vm3, %v229_v59 }
  0xec   :  { %236 = vst.msk [vmem:[%s434_s3 + $0x28] sm:$0xff] %vm230_vm3, %v219_v60  ;;  %244 = vst.msk [vmem:[%s434_s3 + $0x68] sm:$0xff] %vm230_vm3, %v227_v61 }

// kernel: _input_encoder_forward.4
= control target key start
LH: loop header
LB: loop body
LE: loop exit
PB: predicated region body
PF: predicated region fallthrough
CT: control target
= control target key end

     0   :  { %vm204_vm0 = vcmask 261120   ;;  %s527_s1 = inlined_call_operand.vmem [shape: bf16[288,32], index: 1, kind: input, shape index: {}]   ;;  %s528_s0 = inlined_call_operand.vmem [shape: bf16[32,288], index: 0, kind: input, shape index: {}]   ;;  %s529_s2 = inlined_call_operand.vmem [shape: f32[1,32], index: 2, kind: input, shape index: {}]   ;;  %s530_s3 = inlined_call_operand.vmem [shape: f32[32,32], index: 3, kind: output, shape index: {}]  }
   0x1   :  { %v388_v0 = vld [vmem:[%s527_s1 + $0x40] sm:$0xff]   ;;  %v390_v2 = vld [vmem:[%s527_s1 + $0x48] sm:$0xff]   ;;  %v392_v4 = vld [vmem:[%s527_s1 + $0x50] sm:$0xff]  }
   0x2   :  { %v389_v1 = vld [vmem:[%s527_s1] sm:$0xff]   ;;  %348 = vmatprep.subr.bf16.mxu0 %v388_v0  ;;  %v391_v3 = vld [vmem:[%s527_s1 + $0x8] sm:$0xff]   ;;  %v393_v5 = vld [vmem:[%s527_s1 + $0x10] sm:$0xff]  }
   0x3   :  { %349 = vmatpush3.bf16.msra.mxu0 %v389_v1  ;;  %v394_v6 = vld [vmem:[%s527_s1 + $0x58] sm:$0xff]   ;;  %v396_v8 = vld [vmem:[%s527_s1 + $0x60] sm:$0xff]   ;;  %v398_v11 = vld [vmem:[%s527_s1 + $0x68] sm:$0xff]  }
   0x4   :  { %350 = vmatprep.subr.bf16.mxu0 %v390_v2  ;;  %v395_v7 = vld [vmem:[%s527_s1 + $0x18] sm:$0xff]   ;;  %v397_v9 = vld [vmem:[%s527_s1 + $0x20] sm:$0xff]   ;;  %v399_v12 = vld [vmem:[%s527_s1 + $0x28] sm:$0xff]  }
   0x5   :  { %v403_v10 = vld [vmem:[%s527_s1 + $0x80] sm:$0xff]   ;;  %v400_v13 = vld [vmem:[%s527_s1 + $0x70] sm:$0xff]   ;;  %v408_v15 = vld [vmem:[%s527_s1 + $0x88] sm:$0xff]  }
   0x6   :  { %380 = vmatprep.subr.bf16.mxu1 %v403_v10  ;;  %v407_v14 = vld [vmem:[%s528_s0 + $0x4] ss:$12 sps:$4 sm:$0xff]   ;;  %v409_v16 = vld [vmem:[%s528_s0 + $0x8] ss:$12 sps:$4 sm:$0xff]   ;;  %v410_v17 = vld [vmem:[%s528_s0 + $0x20] ss:$12 sps:$4 sm:$0xff]  }
   0x7   :  { %351 = vmatpush3.bf16.msra.mxu0 %v391_v3  ;;  %381 = vmatpush3.bf16.msra.mxu1 %v403_v10  ;;  %v401_v18 = vld [vmem:[%s527_s1 + $0x30] sm:$0xff]   ;;  %v402_v19 = vld [vmem:[%s527_s1 + $0x78] sm:$0xff]   ;;  %v405_v21 = vld [vmem:[%s528_s0] ss:$12 sps:$4 sm:$0xff]  }
   0x8   :  { %352 = vmatprep.subr.bf16.mxu0 %v392_v4  ;;  %243 = vmatprep.mubr.bf16.mxu0 %v407_v14  ;;  %v404_v20 = vld [vmem:[%s527_s1 + $0x38] sm:$0xff]   ;;  %v321_v30 = vld [vmem:[%s529_s2] ss:$0 sm:$0xff] }
   0x9   :  { %382 = vmatprep.subr.bf16.mxu1 %v408_v15  ;;  %384 = vmatprep.mubr.msk.bf16.mxu1 %vm204_vm0, %v409_v16  ;;  %v411_v22 = vld [vmem:[%s528_s0 + $0x1c] ss:$12 sps:$4 sm:$0xff]   ;;  %v413_v23 = vld [vmem:[%s528_s0 + $0x18] ss:$12 sps:$4 sm:$0xff]  }
   0xb   :  { %353 = vmatpush3.bf16.msra.mxu0 %v393_v5  ;;  %383 = vmatpush3.bf16.msra.mxu1 %v408_v15 }
   0xc   :  { %354 = vmatprep.subr.bf16.mxu0 %v394_v6 }
   0xe   :  { %385 = vmatmul.mubr.msk.bf16.vlgmr.msra.gmra.mrb[0].mxu1 %vm204_vm0, %v410_v17 }
   0xf   :  { %355 = vmatpush3.bf16.msra.mxu0 %v395_v7 }
  0x10   :  { %356 = vmatprep.subr.bf16.mxu0 %v396_v8 }
  0x13   :  { %357 = vmatpush3.bf16.msra.mxu0 %v397_v9 }
  0x14   :  { %358 = vmatprep.subr.bf16.mxu0 %v398_v11 }
  0x17   :  { %359 = vmatpush3.bf16.msra.mxu0 %v399_v12 }
  0x18   :  { %360 = vmatprep.subr.bf16.mxu0 %v400_v13 }
  0x1b   :  { %361 = vmatpush3.bf16.msra.mxu0 %v401_v18 }
  0x1c   :  { %362 = vmatprep.subr.bf16.mxu0 %v402_v19 }
  0x1f   :  { %363 = vmatpush3.bf16.msra.mxu0 %v404_v20 }
  0x22   :  { %244 = vmatmul.mubr.bf16.vlgmr.msra.gmra.mrb[0].mxu0 %v405_v21 }
  0x23   :  { %251 = vmatprep.mubr.bf16.mxu0 %v411_v22 }
  0x2a   :  { %252 = vmatmul.mubr.bf16.gmra.mrb[4].mxu0 %v413_v23 }
  0xe1   :  { %v386_v24 = vpop.f32.mrb[0].mxu1 }
  0xe2   :  { %v294_v25 = vpop.f32.mrb[1].mxu1 }
  0xe3   :  { %v387_v26 = vpop.f32.mrb[2].mxu1 }
  0xe4   :  { %v297_v27 = vpop.f32.mrb[3].mxu1 }
  0xf5   :  { %v364_v28 = vpop.f32.mrb[0].mxu0 }
  0xf6   :  { %v365_v29 = vpop.f32.mrb[1].mxu0 }
  0xf7   :  { %v366_v31 = vadd.f32 %v365_v29, %v364_v28  ;;  %v367_v32 = vpop.f32.mrb[2].mxu0 }
  0xf8   :  { %v368_v33 = vpop.f32.mrb[3].mxu0 }
  0xf9   :  { %v369_v34 = vadd.f32 %v368_v33, %v367_v32  ;;  %v246_v35 = vadd.f32 %v366_v31, %v321_v30 }
  0xfb   :  { %v295_v36 = vadd.f32 %v294_v25, %v246_v35  ;;  %v249_v37 = vadd.f32 %v369_v34, %v321_v30 }
  0xfd   :  { %v309_v38 = vmax.f32 %v295_v36, 0.0  ;;  %v298_v39 = vadd.f32 %v297_v27, %v249_v37  ;;  %v370_v40 = vpop.f32.mrb[4].mxu0 }
  0xfe   :  { %v371_v41 = vpop.f32.mrb[5].mxu0 }
  0xff   :  { %313 = vst.msk [vmem:[%s530_s3] sm:$0xff] %vm204_vm0, %v309_v38  ;;  %v310_v42 = vmax.f32 %v298_v39, 0.0  ;;  %v372_v43 = vadd.f32 %v371_v41, %v370_v40  ;;  %v373_v44 = vpop.f32.mrb[6].mxu0 }
 0x100   :  { %v374_v45 = vpop.f32.mrb[7].mxu0 }
 0x101   :  { %314 = vst.msk [vmem:[%s530_s3 + $0x8] sm:$0xff] %vm204_vm0, %v310_v42  ;;  %v254_v46 = vadd.f32 %v372_v43, %v321_v30  ;;  %v375_v47 = vadd.f32 %v374_v45, %v373_v44 }
 0x103   :  { %v303_v48 = vadd.f32 %v386_v24, %v254_v46  ;;  %v257_v49 = vadd.f32 %v375_v47, %v321_v30 }
 0x105   :  { %v311_v50 = vmax.f32 %v303_v48, 0.0  ;;  %v306_v51 = vadd.f32 %v387_v26, %v257_v49 }
 0x107   :  { %315 = vst.msk [vmem:[%s530_s3 + $0x10] sm:$0xff] %vm204_vm0, %v311_v50  ;;  %v312_v52 = vmax.f32 %v306_v51, 0.0 }
 0x109   :  { %316 = vst.msk [vmem:[%s530_s3 + $0x18] sm:$0xff] %vm204_vm0, %v312_v52 }

// kernel: _input_encoder_forward.5
= control target key start
LH: loop header
LB: loop body
LE: loop exit
PB: predicated region body
PF: predicated region fallthrough
CT: control target
= control target key end

     0   :  { %v217_v1 = vmov 0.0   ;;  %vm218_vm0 = vmmov 0   ;;  %s282_s0 = inlined_call_operand.vmem [shape: bf16[8,128], index: 0, kind: input, shape index: {}]   ;;  %s283_s1 = inlined_call_operand.vmem [shape: bf16[128,32], index: 1, kind: input, shape index: {}]   ;;  %s284_s2 = inlined_call_operand.vmem [shape: f32[1,32], index: 2, kind: input, shape index: {}]   ;;  %s285_s3 = inlined_call_operand.hbm [shape: f32[8,32], index: 3, kind: output, shape index: {}]  }
   0x1   :  { %v185_v0 = vld [vmem:[%s283_s1] sm:$0xff]   ;;  %162 = vmatprep.subr.bf16.mxu0 %v217_v1  ;;  %v186_v2 = vld [vmem:[%s283_s1 + $0x8] sm:$0xff]   ;;  %178 = vmatprep.mubr.msk.bf16.mxu0 %vm218_vm0, %v217_v1  ;;  %v187_v3 = vld [vmem:[%s283_s1 + $0x10] sm:$0xff]  }
   0x2   :  { %163 = vmatpush3.bf16.msra.mxu0 %v185_v0 }
   0x3   :  { %164 = vmatprep.subr.bf16.mxu0 %v217_v1 }
   0x6   :  { %165 = vmatpush3.bf16.msra.mxu0 %v186_v2 }
   0x7   :  { %166 = vmatprep.subr.bf16.mxu0 %v217_v1 }
   0x8   :  { %8 = vsyncpa [#allocation3], 0  ;;  %v188_v4 = vld [vmem:[%s283_s1 + $0x18] sm:$0xff]   ;;  %v189_v5 = vld [vmem:[%s283_s1 + $0x20] sm:$0xff]   ;;  %s219_s5 = smov [#allocation2]   ;;  %vm128_vm1 = vcmask 261120  }
   0x9   :  { %v190_v6 = vld [vmem:[%s283_s1 + $0x28] sm:$0xff]   ;;  %v191_v7 = vld [vmem:[%s283_s1 + $0x30] sm:$0xff]   ;;  %v192_v8 = vld [vmem:[%s283_s1 + $0x38] sm:$0xff]   ;;  %s136_s6 = sshll.u32 %s219_s5, 4  ;;  %s137_s6 = int_to_ptr.vmem [resolvable:$true] %s136_s6 }
   0xa   :  { %167 = vmatpush3.bf16.msra.mxu0 %v187_v3  ;;  %v16_v9 = vld [vmem:[%s282_s0] sm:$0xf]  ;;  %s193_s1 = scalar_lea.vmem %s137_s6, 128  ;;  %p198_p1 = scmp.lt.s32.totalorder %s137_s6, %s137_s6 }
   0xb   :  { %168 = vmatprep.subr.bf16.mxu0 %v217_v1  ;;  %v144_v10 = vld [vmem:[%s284_s2] ss:$0 sm:$0xff]  ;;  %p194_p0 = scmp.ne.s32.totalorder %s137_s6, %s193_s1  ;;  %p199_p2 = scmp.lt.s32.totalorder %s193_s1, %s193_s1 }
   0xd   :  { %p200_p3 = por %p199_p2, %p198_p1 }
   0xe   :  { %169 = vmatpush3.bf16.msra.mxu0 %v188_v4 }
   0xf   :  { %170 = vmatprep.subr.bf16.mxu0 %v217_v1  ;;  %p201_p4 = pnand %p200_p3, %p194_p0 }
  0x12   :  { %171 = vmatpush3.bf16.msra.mxu0 %v189_v5 }
  0x13   :  { %172 = vmatprep.subr.bf16.mxu0 %v217_v1 }
  0x16   :  { %173 = vmatpush3.bf16.msra.mxu0 %v190_v6 }
  0x17   :  { %174 = vmatprep.subr.bf16.mxu0 %v217_v1 }
  0x1a   :  { %175 = vmatpush3.bf16.msra.mxu0 %v191_v7 }
  0x1b   :  { %176 = vmatprep.subr.bf16.mxu0 %v217_v1 }
  0x1e   :  { %177 = vmatpush3.bf16.msra.mxu0 %v192_v8 }
  0x21   :  { %179 = vmatmul.mubr.bf16.vlgmr.msra.gmra.mrb[0].mxu0 %v16_v9 }
  0xf4   :  { %v122_v11 = vpop.f32.mrb[0].mxu0 }
  0xf5   :  { %v123_v12 = vadd.f32 %v144_v10, %v122_v11  ;;  %v180_v13 = vpop.f32.mrb[1].mxu0 }
  0xf6   :  { %v125_v14 = vpop.f32.mrb[2].mxu0 }
  0xf7   :  { %v181_v15 = vpop.f32.mrb[3].mxu0  ;;  %129 = vst.msk [vmem:[#allocation2] sm:$0xff] %vm128_vm1, %v123_v12 }
  0xf8   :  { %204 = shalt.err (!%p201_p4)
}
  0xf9   :  { %s205_s2 = scalar_lea.hbm %s285_s3, 128 }
  0xfa   :  { %p206_p5 = scmp.ne.s32.totalorder %s285_s3, %s205_s2  ;;  %p209_p6 = scmp.lt.u32.totalorder %s205_s2, %s285_s3 }
  0xfc   :  { %p211_p7 = pnand %p209_p6, %p206_p5 }
  0xfe   :  { %214 = shalt.err (!%p211_p7)
}
  0xff   :  { %139 = dma.vmem_to_hbm [thread:$0]  %s137_s6, 128, %s285_s3, [#allocation3]  }
 0x100   :  { %215 = dma.done.wait [#allocation3], 128  }
 0x101   :  { %216 = vsyncadd [#allocation3], 4294967168 }
 0x102   :  { %143 = vsyncpa [#allocation3], 1 }

</bundles_post_ra>
